<compile_context>
chip_gen: v7x
topology: tpu7x:2x2x1
jax: 0.10.0
libtpu: 0.0.40
codegen_flags: <defaults>
</compile_context>

<pallas_src>
import functools
import math

import jax
import jax.numpy as jnp
from jax import lax
from jax.experimental import pallas as pl
from jax.experimental.pallas import tpu as pltpu


_LANE = 128
_SUBLANE = 8
_OUT_BLOCK_BYTES = 8 * 1024 * 1024   # per-grid-step byte budget (output tile + staged target tile)
_VMEM_LIMIT = 48 * 1024 * 1024       # explicit scoped-VMEM budget, safe on v5e/v6e (128 MiB) and v7x (64 MiB)
_FLAT_MAX_CLASS = 64                 # lane-dense flat path for narrow vocabularies (expand matrix <= 4 MiB)


def _flat_kernel(t_ref, e_ref, c_ref, o_ref, *, on_value, off_value):
    # Lane-dense path.  Shapes:
    #   t_ref: (tb, 128)   int32   -- targets, lane-dense (row r_local of group s at lane r_local)
    #   e_ref: (128, L)    float32 -- constant expansion matrix, E[j, k] = (k // C == j)
    #   c_ref: (1, L)      float32 -- constant class pattern, c_ref[0, k] = k % C
    #   o_ref: (tb, L)     out     -- flat view of 128*tb rows of the (N, C) output
    # t_exp[s, k] = target[s*128 + k // C]  (exact: integer values, one-hot matmul on the MXU).
    t_exp = jnp.dot(t_ref[...].astype(jnp.float32), e_ref[...],
                    preferred_element_type=jnp.float32)
    hit = t_exp == c_ref[...]                                   # (1, L) broadcast over sublanes
    o_ref[...] = jnp.where(hit, jnp.float32(on_value),
                           jnp.float32(off_value)).astype(o_ref.dtype)


def _row_major_kernel(t_ref, o_ref, *, on_value, off_value, multi_class_blocks):
    # Fallback path.  Shapes:
    #   t_ref: (tm, 1)  int32 -- class index per row
    #   o_ref: (tm, tc) out   -- smoothed one-hot tile
    tc = o_ref.shape[1]
    class_ids = lax.broadcasted_iota(jnp.int32, (1, tc), 1)     # single row; broadcast is cheap
    if multi_class_blocks:
        class_ids = class_ids + pl.program_id(1) * tc
    hit = class_ids == t_ref[...]                               # (1,tc) vs (tm,1) -> (tm,tc)
    o_ref[...] = jnp.where(hit, jnp.float32(on_value),
                           jnp.float32(off_value)).astype(o_ref.dtype)


def _flat_call(target_flat, n, num_class, on_value, off_value, out_dtype, block_bytes):
    # (N, C) viewed as (N/128, 128*C): identical row-major layout, free reshape at the end.
    L = _LANE * num_class
    n128 = n // _LANE
    t_lanes = target_flat.reshape(n128, _LANE).astype(jnp.int32)
    expand = jnp.repeat(jnp.eye(_LANE, dtype=jnp.float32), num_class, axis=1)      # (128, L)
    c_pat = jnp.tile(jnp.arange(num_class, dtype=jnp.float32), _LANE)[None, :]     # (1, L)

    # Rows-of-128 per block; budget covers the output tile and the lane-dense target tile.
    tb = max(1, block_bytes // (4 * (L + _LANE)))
    tb = min(tb, n128)
    if tb < n128:
        tb = max(_SUBLANE, (tb // _SUBLANE) * _SUBLANE)
    grid = (pl.cdiv(n128, tb),)

    kernel = functools.partial(_flat_kernel, on_value=on_value, off_value=off_value)
    out = pl.pallas_call(
        kernel,
        out_shape=jax.ShapeDtypeStruct((n128, L), out_dtype),
        grid_spec=pltpu.PrefetchScalarGridSpec(
            num_scalar_prefetch=0,
            grid=grid,
            in_specs=[
                pl.BlockSpec((tb, _LANE), lambda i: (i, 0)),
                pl.BlockSpec((_LANE, L), lambda i: (0, 0)),   # constant -> fetched once, stays resident
                pl.BlockSpec((1, L), lambda i: (0, 0)),       # constant -> fetched once, stays resident
            ],
            out_specs=pl.BlockSpec((tb, L), lambda i: (i, 0)),
        ),
        compiler_params=pltpu.CompilerParams(
            dimension_semantics=("parallel",),
            vmem_limit_bytes=_VMEM_LIMIT,
        ),
    )(t_lanes, expand, c_pat)
    return out.reshape(n, num_class)      # free: same HBM layout


def _row_major_call(target_flat, n, num_class, on_value, off_value, out_dtype, block_bytes):
    t2d = target_flat.reshape(n, 1).astype(jnp.int32)

    # Class tile: whole axis (contiguous HBM writes, 1-D effective grid) unless a single
    # 8-row block would blow the budget (num_class > ~256K with the default budget).
    if _SUBLANE * num_class * 4 > block_bytes:
        tc = max(_LANE, (block_bytes // (_SUBLANE * 4) // _LANE) * _LANE)
    else:
        tc = num_class

    # Row tile: budget both the (lane-padded) output tile and the (tm, 1) target tile,
    # which pads to tm x 128 lanes in VMEM (review item 1b).
    lane_c = max(tc, _LANE)
    tm = max(1, block_bytes // (4 * (lane_c + _LANE)))
    tm = min(tm, n)
    if tm < n:
        tm = max(_SUBLANE, (tm // _SUBLANE) * _SUBLANE)

    grid = (pl.cdiv(n, tm), pl.cdiv(num_class, tc))
    kernel = functools.partial(
        _row_major_kernel, on_value=on_value, off_value=off_value,
        multi_class_blocks=grid[1] > 1)

    out = pl.pallas_call(
        kernel,
        out_shape=jax.ShapeDtypeStruct((n, num_class), out_dtype),
        grid_spec=pltpu.PrefetchScalarGridSpec(
            num_scalar_prefetch=0,
            grid=grid,
            in_specs=[pl.BlockSpec((tm, 1), lambda i, j: (i, 0))],
            out_specs=pl.BlockSpec((tm, tc), lambda i, j: (i, j)),
        ),
        compiler_params=pltpu.CompilerParams(
            dimension_semantics=("parallel", "parallel"),
            vmem_limit_bytes=_VMEM_LIMIT,
        ),
    )(t2d)
    return out


def label_smoothing(target, num_class=10, alpha=0.1, *, out_dtype=jnp.float32,
                    block_bytes=None):
    """Pallas-TPU forward of LabelSmoothing.

    target: integer array of class indices (any shape).
    Returns `out_dtype` array of shape target.shape + (num_class,).
    """
    assert 0.0 <= alpha < 1.0
    num_class = int(num_class)
    assert num_class >= 1
    if block_bytes is None:
        block_bytes = _OUT_BLOCK_BYTES

    target = jnp.asarray(target)
    lead_shape = target.shape
    n = math.prod(lead_shape)

    off_value = float(alpha) / num_class
    on_value = 1.0 - float(alpha) + off_value

    if n == 0:
        return jnp.zeros((*lead_shape, num_class), out_dtype)

    target_flat = target.reshape(n)

    # Lane-dense flat path whenever the vocabulary is narrow and N groups evenly
    # into 128-row lane tiles; otherwise the plain row-major path.
    if num_class <= _FLAT_MAX_CLASS and n % _LANE == 0:
        out2d = _flat_call(target_flat, n, num_class, on_value, off_value,
                           out_dtype, block_bytes)
    else:
        out2d = _row_major_call(target_flat, n, num_class, on_value, off_value,
                                out_dtype, block_bytes)
    return out2d.reshape(*lead_shape, num_class)


def _reference(target, num_class, alpha):
    oh = jax.nn.one_hot(target, num_class, dtype=jnp.float32)
    return (1.0 - alpha) * oh + alpha / num_class


if __name__ == "__main__":
    key = jax.random.PRNGKey(0)
    cases = [
        # module defaults, multi-dim target, row-major path (n % 128 != 0)
        dict(shape=(2, 4), C=10, alpha=0.1, dtype=jnp.float32, bb=None),
        # ragged row blocks on the row-major path (grid = 3 x 1)
        dict(shape=(40,), C=10, alpha=0.3, dtype=jnp.float32, bb=16 * 1024),
        # lane-dense flat path, single block
        dict(shape=(2, 128), C=10, alpha=0.1, dtype=jnp.float32, bb=None),
        # lane-dense flat path, multiple blocks with a ragged tail block
        dict(shape=(2560,), C=10, alpha=0.1, dtype=jnp.float32, bb=64 * 1024),
        # wide vocabulary, full class axis in one block
        dict(shape=(16,), C=1024, alpha=0.05, dtype=jnp.float32, bb=None),
        # wide vocabulary with a forced class-axis split (grid = 2 x 2)
        dict(shape=(16,), C=1024, alpha=0.05, dtype=jnp.float32, bb=16 * 1024),
        # optional bf16 output (halves HBM writeback)
        dict(shape=(128,), C=10, alpha=0.1, dtype=jnp.bfloat16, bb=None),
    ]
    for i, c in enumerate(cases):
        key, sub = jax.random.split(key)
        tgt = jax.random.randint(sub, c["shape"], 0, c["C"], dtype=jnp.int32)
        out = label_smoothing(tgt, num_class=c["C"], alpha=c["alpha"],
                              out_dtype=c["dtype"], block_bytes=c["bb"])
        out = jax.block_until_ready(out)
        ref = _reference(tgt, c["C"], c["alpha"])
        assert out.shape == (*c["shape"], c["C"]), (i, out.shape)
        assert out.dtype == c["dtype"], (i, out.dtype)
        atol = 1e-6 if c["dtype"] == jnp.float32 else 1e-2
        assert jnp.allclose(out.astype(jnp.float32), ref, rtol=0, atol=atol), \
            f"case {i}: mismatch vs reference"
    print("KERNEL_OK")
</pallas_src>

<mosaic_0001>
module attributes {stable_mosaic.version = 11 : i64} {
  func.func @_row_major_kernel(%arg0: i32, %arg1: i32, %arg2: memref<8x1xi32, #tpu.memory_space<vmem>>, %arg3: memref<8x10xf32, #tpu.memory_space<vmem>>) attributes {dimension_semantics = [#tpu.dimension_semantics<parallel>, #tpu.dimension_semantics<parallel>], iteration_bounds = array<i64: 1, 1>, scalar_prefetch = 0 : i64, scratch_operands = 0 : i64, tpu.core_type = #tpu.core_type<tc>, window_params = [{transform_indices = @transform_0, window_bounds = array<i64: 8, 1>}, {transform_indices = @transform_1, window_bounds = array<i64: 8, 10>}]} {
    %0 = tpu.iota {dimensions = array<i32: 1>} : vector<1x10xi32>
    %c0 = arith.constant 0 : index
    %c0_0 = arith.constant 0 : index
    %1 = vector.load %arg2[%c0, %c0_0] : memref<8x1xi32, #tpu.memory_space<vmem>>, vector<8x1xi32>
    %2 = vector.broadcast %0 : vector<1x10xi32> to vector<8x10xi32>
    %3 = vector.broadcast %1 : vector<8x1xi32> to vector<8x10xi32>
    %4 = arith.cmpi eq, %2, %3 : vector<8x10xi32>
    %cst = arith.constant 9.100000e-01 : f32
    %cst_1 = arith.constant 0.00999999977 : f32
    %5 = vector.broadcast %cst : f32 to vector<8x10xf32>
    %6 = vector.broadcast %cst_1 : f32 to vector<8x10xf32>
    %7 = arith.select %4, %5, %6 : vector<8x10xi1>, vector<8x10xf32>
    %c0_2 = arith.constant 0 : index
    %c0_3 = arith.constant 0 : index
    %8 = vector.load %arg3[%c0_2, %c0_3] : memref<8x10xf32, #tpu.memory_space<vmem>>, vector<8x10xf32>
    tpu.vector_store %arg3[%c0_2, %c0_3], %7 {strides = array<i32>} : memref<8x10xf32, #tpu.memory_space<vmem>>, vector<8x10xf32>,
    return
  }
  func.func @transform_0(%arg0: i32, %arg1: i32) -> (i32, i32) {
    %c0_i32 = arith.constant 0 : i32
    %c0_i32_0 = arith.constant 0 : i32
    return %arg0, %c0_i32 : i32, i32
  }
  func.func @transform_1(%arg0: i32, %arg1: i32) -> (i32, i32) {
    %c0_i32 = arith.constant 0 : i32
    return %arg0, %arg1 : i32, i32
  }
}

</mosaic_0001>

<bundles_post_ra>
// kernel: tpu_custom_call.1
= control target key start
LH: loop header
LB: loop body
LE: loop exit
PB: predicated region body
PF: predicated region fallthrough
CT: control target
= control target key end

     0   :  { %s89_s0 = inlined_call_operand.vmem [shape: s32[8,1], index: 0, kind: input, shape index: {}]   ;;  %s90_s1 = inlined_call_operand.hbm [shape: f32[8,10], index: 1, kind: output, shape index: {}]  }
   0x1   :  { %v11_v0 = vld [vmem:[%s89_s0] sm:$0xff] }
   0x2   :  { %6 = vsyncpa [#allocation3], 0  ;;  %v61_v1 = vmov 0   ;;  %v9_v2 = vlaneseq  ;;  %s62_s8 = smov [#allocation2]   ;;  %vm17_vm0 = vcmask 80896  }
   0x3   :  { %36 = vset.pattern.permute.xlu0 %v61_v1  ;;  %s25_s9 = sshll.u32 %s62_s8, 4  ;;  %v63_v5 = vmov 0.01   ;;  %s26_s9 = int_to_ptr.vmem [resolvable:$true] %s25_s9 }
   0x4   :  { %13 = vperm.xlu0 %36, %v11_v0   ;;  %v10_v3 = vand.u32 127, %v9_v2  ;;  %s37_s10 = scalar_lea.vmem %s26_s9, 128  ;;  %p42_p1 = scmp.lt.s32.totalorder %s26_s9, %s26_s9 }
   0x5   :  { %p38_p0 = scmp.ne.s32.totalorder %s26_s9, %s37_s10  ;;  %p43_p2 = scmp.lt.s32.totalorder %s37_s10, %s37_s10 }
   0x7   :  { %p44_p3 = por %p43_p2, %p42_p1 }
   0x9   :  { %p45_p4 = pnand %p44_p3, %p38_p0 }
  0x83   :  { %v14_v4 = vpop.permute.xlu0 %13 }
  0x84   :  { %vm15_vm1 = vcmp.eq.s32.totalorder %v10_v3, %v14_v4 }
  0x85   :  { %v16_v6 = vsel %vm15_vm1, 0.91, %v63_v5 }
  0x86   :  { %18 = vst.msk [vmem:[#allocation2] sm:$0xff] %vm17_vm0, %v16_v6 }
  0x87   :  { %48 = shalt.err (!%p45_p4)
}
  0x88   :  { %s49_s12 = scalar_lea.hbm %s90_s1, 128 }
  0x89   :  { %p50_p5 = scmp.ne.s32.totalorder %s90_s1, %s49_s12  ;;  %p53_p6 = scmp.lt.u32.totalorder %s49_s12, %s90_s1 }
  0x8b   :  { %p55_p7 = pnand %p53_p6, %p50_p5 }
  0x8d   :  { %58 = shalt.err (!%p55_p7)
}
  0x8e   :  { %28 = dma.vmem_to_hbm [thread:$0]  %s26_s9, 128, %s90_s1, [#allocation3]  }
  0x8f   :  { %59 = dma.done.wait [#allocation3], 128  }
  0x90   :  { %60 = vsyncadd [#allocation3], 4294967168 }
  0x91   :  { %32 = vsyncpa [#allocation3], 1 }

</bundles_post_ra>
